<compile_context>
chip_gen: v7x
topology: tpu7x:2x2x1
jax: 0.10.0
libtpu: 0.0.40
codegen_flags: <defaults>
</compile_context>

<pallas_src>
import math
import numpy as np
import jax
import jax.numpy as jnp
from jax.experimental import pallas as pl
from jax.experimental.pallas import tpu as pltpu


# ------------------------------ helpers -------------------------------------
def _round_up(x, m):
    return ((x + m - 1) // m) * m


def _pick_tile(d_pad, max_tile=1024):
    # d_pad is a multiple of 128; return the largest multiple of 128 that
    # divides d_pad and is <= max_tile.
    t = min(d_pad, max_tile)
    while d_pad % t != 0:
        t -= 128
    return max(t, 128)


# ----------------------------- Pallas kernel --------------------------------
def _fused_dyn_kernel(t_ref, y_ref, w_ref, b_ref, o_ref, acc_ref):
    # t_ref  : SMEM (1, 1)  scalar time
    # y_ref  : VMEM (1, tk) state slice (K tile), f32
    # w_ref  : VMEM (tk, tn) bf16 block-diagonal weight tile
    # b_ref  : VMEM (1, tn) f32 bias slice (N tile)
    # o_ref  : VMEM (1, tn) output slice (N tile)
    # acc_ref: VMEM (1, tn) f32 accumulator scratch
    k = pl.program_id(1)

    @pl.when(k == 0)
    def _init():
        acc_ref[...] = t_ref[0, 0] * b_ref[...]

    acc_ref[...] += jnp.dot(
        y_ref[...].astype(w_ref.dtype), w_ref[...],
        preferred_element_type=jnp.float32)

    @pl.when(k == pl.num_programs(1) - 1)
    def _finalize():
        o_ref[...] = jnp.tanh(acc_ref[...]).astype(o_ref.dtype)


def _fused_dynamics_pallas(t, y_pad, w_bf16, b_f32, *, tn, tk):
    """f(t, y) = tanh(y @ W + t * b) on a lane-dense padded state (1, D_pad)."""
    _, d_pad = y_pad.shape
    gn, gk = d_pad // tn, d_pad // tk
    t_arr = jnp.asarray(t, jnp.float32).reshape(1, 1)
    return pl.pallas_call(
        _fused_dyn_kernel,
        out_shape=jax.ShapeDtypeStruct((1, d_pad), y_pad.dtype),
        grid_spec=pltpu.PrefetchScalarGridSpec(
            num_scalar_prefetch=0,
            grid=(gn, gk),
            in_specs=[
                pl.BlockSpec((1, 1), lambda n, k: (0, 0),
                             memory_space=pltpu.MemorySpace.SMEM),   # t scalar
                pl.BlockSpec((1, tk), lambda n, k: (0, k)),          # y (K tile)
                pl.BlockSpec((tk, tn), lambda n, k: (k, n)),         # W tile
                pl.BlockSpec((1, tn), lambda n, k: (0, n)),          # b (N tile)
            ],
            out_specs=pl.BlockSpec((1, tn), lambda n, k: (0, n)),
            scratch_shapes=[pltpu.VMEM((1, tn), jnp.float32)],
        ),
        compiler_params=pltpu.CompilerParams(
            dimension_semantics=("parallel", "arbitrary"),
            vmem_limit_bytes=32 * 1024 * 1024,
        ),
    )(t_arr, y_pad, w_bf16, b_f32)


# ------------------------- _WrapFunc helpers (glue) --------------------------
def _flat_to_shape(tensor, length, shapes):
    tensor_list = []
    total = 0
    for shape in shapes:
        numel = int(np.prod(shape)) if len(shape) > 0 else 1
        next_total = total + numel
        tensor_list.append(tensor[..., total:next_total].reshape((*length, *shape)))
        total = next_total
    return tuple(tensor_list)


def _shape_to_flat(tensors):
    return jnp.concatenate([t.reshape(-1) for t in tensors])


# -------------------------------- _WrapFunc ----------------------------------
class WrapFunc:
    """JAX port of torchdiffeq's _WrapFunc forward semantics."""

    def __init__(self, base_func, is_tuple, is_reversed, shapes):
        self.base_func = base_func
        self.is_tuple = is_tuple
        self.is_reversed = is_reversed
        self.shapes = shapes

    def __call__(self, t, y, perturb=None):
        t = jnp.asarray(t, dtype=y.dtype)
        if perturb is True:
            t = jnp.nextafter(t, jnp.asarray(math.inf, dtype=t.dtype))
        elif perturb is False:
            t = jnp.nextafter(t, jnp.asarray(-math.inf, dtype=t.dtype))
        if self.is_reversed:
            t = -t
        if self.is_tuple:
            y = _flat_to_shape(y, (), self.shapes)
        f = self.base_func(t, y)
        if self.is_tuple:
            f = _shape_to_flat(f)
        if self.is_reversed:
            f = -f
        return f


# -------- deterministic synthetic base_func (fused, block-diagonal) ----------
def make_base_func(shapes, key, max_tile=1024):
    numels = [int(np.prod(s)) if len(s) > 0 else 1 for s in shapes]
    d_total = int(sum(numels))
    d_pad = _round_up(d_total, 128)             # lane-dense padded state width

    # Block-diagonal weight / bias over the whole flat state, zero-padded.
    w_full = np.zeros((d_pad, d_pad), np.float32)
    b_full = np.zeros((d_pad,), np.float32)
    off = 0
    for n_i in numels:
        key, k1, k2 = jax.random.split(key, 3)
        w_full[off:off + n_i, off:off + n_i] = (
            np.asarray(jax.random.normal(k1, (n_i, n_i), jnp.float32)) * 0.1)
        b_full[off:off + n_i] = (
            np.asarray(jax.random.normal(k2, (n_i,), jnp.float32)) * 0.1)
        off += n_i

    w_bf16 = jnp.asarray(w_full, jnp.bfloat16)   # bf16 weights: half the HBM bytes
    b_f32 = jnp.asarray(b_full, jnp.float32).reshape(1, d_pad)

    tn = _pick_tile(d_pad, max_tile)
    tk = _pick_tile(d_pad, max_tile)

    def _pack(y_tuple):
        y_flat = jnp.concatenate([yi.reshape(-1) for yi in y_tuple])
        return jnp.zeros((1, d_pad), y_flat.dtype).at[0, :d_total].set(y_flat)

    def _unpack(f_flat):
        outs, o = [], 0
        for s, n_i in zip(shapes, numels):
            outs.append(f_flat[o:o + n_i].reshape(s))
            o += n_i
        return tuple(outs)

    def base_func(t, y_tuple):
        # Single fused Pallas launch over the whole block-diagonal state.
        y_pad = _pack(y_tuple)
        f_pad = _fused_dynamics_pallas(t, y_pad, w_bf16, b_f32, tn=tn, tk=tk)
        return _unpack(f_pad[0, :d_total])

    def ref_base_func(t, y_tuple):
        # Pure-JAX reference with the identical bf16-weight / f32-accum path.
        y_pad = _pack(y_tuple)
        z = jnp.dot(y_pad.astype(jnp.bfloat16), w_bf16,
                    preferred_element_type=jnp.float32)
        f_pad = jnp.tanh(z + jnp.asarray(t, jnp.float32) * b_f32)
        return _unpack(f_pad[0, :d_total].astype(y_pad.dtype))

    return base_func, ref_base_func


# ---------------------------------- main --------------------------------------
if __name__ == "__main__":
    key = jax.random.PRNGKey(0)
    shapes = [(4, 8), (2, 16)]                 # tuple-state shapes (numels 32 + 32)
    total = sum(int(np.prod(s)) for s in shapes)

    key, ky, kp = jax.random.split(key, 3)
    y = jax.random.normal(ky, (total,), jnp.float32)   # flat state vector (64,)
    t = jnp.float32(0.5)

    base_func, ref_base_func = make_base_func(shapes, kp)
    func = WrapFunc(base_func, is_tuple=True, is_reversed=True, shapes=shapes)
    ref_func = WrapFunc(ref_base_func, is_tuple=True, is_reversed=True, shapes=shapes)

    f = func(t, y, perturb=True)               # exercise nextafter + reversal paths
    jax.block_until_ready(f)
    f_ref = ref_func(t, y, perturb=True)

    assert f.shape == (total,) and f.dtype == jnp.float32
    np.testing.assert_allclose(np.asarray(f), np.asarray(f_ref),
                               rtol=2e-2, atol=2e-2)
    print("KERNEL_OK")
</pallas_src>

<mosaic_0001>
module attributes {stable_mosaic.version = 11 : i64} {
  func.func @_fused_dyn_kernel(%arg0: i32, %arg1: i32, %arg2: memref<1x1xf32, #tpu.memory_space<smem>>, %arg3: memref<1x128xf32, #tpu.memory_space<vmem>>, %arg4: memref<128x128xbf16, #tpu.memory_space<vmem>>, %arg5: memref<1x128xf32, #tpu.memory_space<vmem>>, %arg6: memref<1x128xf32, #tpu.memory_space<vmem>>, %arg7: memref<1x128xf32, #tpu.memory_space<vmem>>) attributes {dimension_semantics = [#tpu.dimension_semantics<parallel>, #tpu.dimension_semantics<arbitrary>], iteration_bounds = array<i64: 1, 1>, scalar_prefetch = 0 : i64, scratch_operands = 1 : i64, tpu.core_type = #tpu.core_type<tc>, window_params = [{transform_indices = @transform_0, window_bounds = array<i64: 1, 1>}, {transform_indices = @transform_1, window_bounds = array<i64: 1, 128>}, {transform_indices = @transform_2, window_bounds = array<i64: 128, 128>}, {transform_indices = @transform_3, window_bounds = array<i64: 1, 128>}, {transform_indices = @transform_4, window_bounds = array<i64: 1, 128>}]} {
    %c0_i32 = arith.constant 0 : i32
    %0 = arith.cmpi eq, %arg1, %c0_i32 : i32
    %1 = arith.extui %0 : i1 to i32
    %c0_i32_0 = arith.constant 0 : i32
    %2 = arith.cmpi ne, %1, %c0_i32_0 : i32
    scf.if %2 {
      %c0_10 = arith.constant 0 : index
      %c0_11 = arith.constant 0 : index
      %13 = memref.load %arg2[%c0_10, %c0_11] : memref<1x1xf32, #tpu.memory_space<smem>>
      %c0_12 = arith.constant 0 : index
      %c0_13 = arith.constant 0 : index
      %14 = vector.load %arg5[%c0_12, %c0_13] : memref<1x128xf32, #tpu.memory_space<vmem>>, vector<1x128xf32>
      %15 = vector.broadcast %13 : f32 to vector<1x128xf32>
      %16 = arith.mulf %15, %14 : vector<1x128xf32>
      %c0_14 = arith.constant 0 : index
      %c0_15 = arith.constant 0 : index
      %17 = vector.load %arg7[%c0_14, %c0_15] : memref<1x128xf32, #tpu.memory_space<vmem>>, vector<1x128xf32>
      tpu.vector_store %arg7[%c0_14, %c0_15], %16 {strides = array<i32>} : memref<1x128xf32, #tpu.memory_space<vmem>>, vector<1x128xf32>,
    } else {
    }
    %c0 = arith.constant 0 : index
    %c0_1 = arith.constant 0 : index
    %3 = vector.load %arg7[%c0, %c0_1] : memref<1x128xf32, #tpu.memory_space<vmem>>, vector<1x128xf32>
    %c0_2 = arith.constant 0 : index
    %c0_3 = arith.constant 0 : index
    %4 = vector.load %arg3[%c0_2, %c0_3] : memref<1x128xf32, #tpu.memory_space<vmem>>, vector<1x128xf32>
    %5 = arith.truncf %4 : vector<1x128xf32> to vector<1x128xbf16>
    %c0_4 = arith.constant 0 : index
    %c0_5 = arith.constant 0 : index
    %6 = vector.load %arg4[%c0_4, %c0_5] : memref<128x128xbf16, #tpu.memory_space<vmem>>, vector<128x128xbf16>
    %cst = arith.constant dense<0.000000e+00> : vector<1x128xf32>
    %7 = tpu.matmul %5, %6, %cst {dimension_numbers = #tpu.dot_dimension_numbers<[1], [0], [0], [1], [0, 0, 1, 1], [], []>} : vector<1x128xbf16>, vector<128x128xbf16>, vector<1x128xf32> -> vector<1x128xf32>
    %8 = arith.addf %3, %7 : vector<1x128xf32>
    %c0_6 = arith.constant 0 : index
    %c0_7 = arith.constant 0 : index
    %9 = vector.load %arg7[%c0_6, %c0_7] : memref<1x128xf32, #tpu.memory_space<vmem>>, vector<1x128xf32>
    tpu.vector_store %arg7[%c0_6, %c0_7], %8 {strides = array<i32>} : memref<1x128xf32, #tpu.memory_space<vmem>>, vector<1x128xf32>,
    %c0_i32_8 = arith.constant 0 : i32
    %10 = arith.cmpi eq, %arg1, %c0_i32_8 : i32
    %11 = arith.extui %10 : i1 to i32
    %c0_i32_9 = arith.constant 0 : i32
    %12 = arith.cmpi ne, %11, %c0_i32_9 : i32
    scf.if %12 {
      %c0_10 = arith.constant 0 : index
      %c0_11 = arith.constant 0 : index
      %13 = vector.load %arg7[%c0_10, %c0_11] : memref<1x128xf32, #tpu.memory_space<vmem>>, vector<1x128xf32>
      %14 = math.tanh %13 : vector<1x128xf32>
      %c0_12 = arith.constant 0 : index
      %c0_13 = arith.constant 0 : index
      %15 = vector.load %arg6[%c0_12, %c0_13] : memref<1x128xf32, #tpu.memory_space<vmem>>, vector<1x128xf32>
      tpu.vector_store %arg6[%c0_12, %c0_13], %14 {strides = array<i32>} : memref<1x128xf32, #tpu.memory_space<vmem>>, vector<1x128xf32>,
    } else {
    }
    return
  }
  func.func @transform_0(%arg0: i32, %arg1: i32) -> (i32, i32) {
    %c0_i32 = arith.constant 0 : i32
    %c0_i32_0 = arith.constant 0 : i32
    %c0_i32_1 = arith.constant 0 : i32
    return %c0_i32, %c0_i32_0 : i32, i32
  }
  func.func @transform_1(%arg0: i32, %arg1: i32) -> (i32, i32) {
    %c0_i32 = arith.constant 0 : i32
    %c0_i32_0 = arith.constant 0 : i32
    return %c0_i32, %arg1 : i32, i32
  }
  func.func @transform_2(%arg0: i32, %arg1: i32) -> (i32, i32) {
    %c0_i32 = arith.constant 0 : i32
    return %arg1, %arg0 : i32, i32
  }
  func.func @transform_3(%arg0: i32, %arg1: i32) -> (i32, i32) {
    %c0_i32 = arith.constant 0 : i32
    %c0_i32_0 = arith.constant 0 : i32
    return %c0_i32, %arg0 : i32, i32
  }
  func.func @transform_4(%arg0: i32, %arg1: i32) -> (i32, i32) {
    %c0_i32 = arith.constant 0 : i32
    %c0_i32_0 = arith.constant 0 : i32
    return %c0_i32, %arg0 : i32, i32
  }
}

</mosaic_0001>

<bundles_post_ra>
// kernel: tpu_custom_call.1
= control target key start
LH: loop header
LB: loop body
LE: loop exit
PB: predicated region body
PF: predicated region fallthrough
CT: control target
= control target key end

     0   :  { %10 = vsyncpa [#allocation5], 0  ;;  %s338_s0 = inlined_call_operand.<no memory space> [shape: f32[1,1], index: 0, kind: input, shape index: {}]   ;;  %s339_s1 = inlined_call_operand.vmem [shape: f32[1,128], index: 1, kind: input, shape index: {}]   ;;  %s340_s2 = inlined_call_operand.hbm [shape: bf16[128,128], index: 2, kind: input, shape index: {}]   ;;  %s341_s3 = inlined_call_operand.vmem [shape: f32[1,128], index: 3, kind: input, shape index: {}]   ;;  %s342_s4 = inlined_call_operand.hbm [shape: f32[1,128], index: 4, kind: output, shape index: {}]  }
   0x1   :  { %11 = vsyncpa [#allocation6], 0  ;;  %s274_s15 = smov [#allocation4]   ;;  %s226_s19 = scalar_lea.hbm %s340_s2, 1024 }
   0x2   :  { %s21_s16 = sshll.u32 %s274_s15, 4  ;;  %p227_p0 = scmp.ne.s32.totalorder %s340_s2, %s226_s19  ;;  %s22_s16 = int_to_ptr.vmem [resolvable:$true] %s21_s16 }
   0x3   :  { %p230_p1 = scmp.lt.u32.totalorder %s226_s19, %s340_s2 }
   0x5   :  { %p232_p2 = pnand %p230_p1, %p227_p0 }
   0x7   :  { %235 = shalt.err (!%p232_p2)
}
   0x8   :  { %s236_s24 = scalar_lea.vmem %s22_s16, 1024  ;;  %p241_p4 = scmp.lt.s32.totalorder %s22_s16, %s22_s16 }
   0x9   :  { %p237_p3 = scmp.ne.s32.totalorder %s22_s16, %s236_s24  ;;  %p242_p5 = scmp.lt.s32.totalorder %s236_s24, %s236_s24 }
   0xb   :  { %p243_p6 = por %p242_p5, %p241_p4 }
   0xd   :  { %p244_p7 = pnand %p243_p6, %p237_p3 }
   0xf   :  { %247 = shalt.err (!%p244_p7)
}
  0x10   :  { %s275_s25 = smov 64   ;;  %s276_s26 = smov 4  }
  0x11   :  { %27 = dma.hbm_to_vmem [thread:$0]  %s340_s2, 1024, %s22_s16, [#allocation5], %s275_s25, %s275_s25, %s276_s26  }
  0x12   :  { %270 = dma.done.wait [#allocation5], 1024  }
  0x13   :  { %271 = vsyncadd [#allocation5], 4294966272  ;;  %v277_v0 = vmov 0.0   ;;  %vm278_vm0 = vmmov 0   ;;  %v216_v1 = vld [vmem:[#allocation4] sm:$0xff]   ;;  %v217_v2 = vld [vmem:[#allocation4 + $0x8] sm:$0xff]   ;;  %v40_v4 = vstv %s338_s0 }
  0x14   :  { %190 = vmatprep.subr.bf16.mxu0 %v277_v0  ;;  %206 = vmatprep.mubr.msk.bf16.mxu0 %vm278_vm0, %v277_v0  ;;  %v218_v3 = vld [vmem:[#allocation4 + $0x10] sm:$0xff]   ;;  %v39_v5 = vld [vmem:[%s341_s3] sm:$0x1]  ;;  %v220_v8 = vld [vmem:[#allocation4 + $0x20] sm:$0xff]   ;;  %s279_s3 = smov [#allocation7]  }
  0x15   :  { %191 = vmatpush3.bf16.msra.mxu0 %v216_v1  ;;  %v41_v6 = vmul.f32 %v40_v4, %v39_v5  ;;  %v219_v7 = vld [vmem:[#allocation4 + $0x18] sm:$0xff]   ;;  %v221_v9 = vld [vmem:[#allocation4 + $0x28] sm:$0xff]   ;;  %v222_v10 = vld [vmem:[#allocation4 + $0x30] sm:$0xff]   ;;  %s164_s7 = sshll.u32 %s279_s3, 4  ;;  %s165_s7 = int_to_ptr.vmem [resolvable:$true] %s164_s7 }
  0x16   :  { %192 = vmatprep.subr.bf16.mxu0 %v277_v0  ;;  %v223_v11 = vld [vmem:[#allocation4 + $0x38] sm:$0xff]   ;;  %s248_s8 = scalar_lea.vmem %s165_s7, 16  ;;  %p253_p9 = scmp.lt.s32.totalorder %s165_s7, %s165_s7 }
  0x17   :  { %42 = vst [vmem:[#allocation2] sm:$0x1] %v41_v6  ;;  %v44_v12 = vld [vmem:[%s339_s1] sm:$0x1]  ;;  %p249_p8 = scmp.ne.s32.totalorder %s165_s7, %s248_s8  ;;  %s252_s1 = scalar_lea.vmem %s165_s7, 32 }
  0x18   :  { %v45_v13 = vpack.c.bf16 %v44_v12, %v44_v12  ;;  %p254_p10 = scmp.lt.s32.totalorder %s252_s1, %s248_s8 }
  0x19   :  { %193 = vmatpush3.bf16.msra.mxu0 %v217_v2 }
  0x1a   :  { %194 = vmatprep.subr.bf16.mxu0 %v277_v0  ;;  %p255_p11 = por %p254_p10, %p253_p9 }
  0x1c   :  { %p256_p12 = pnand %p255_p11, %p249_p8 }
  0x1d   :  { %195 = vmatpush3.bf16.msra.mxu0 %v218_v3 }
  0x1e   :  { %196 = vmatprep.subr.bf16.mxu0 %v277_v0  ;;  %v43_v14 = vld [vmem:[#allocation2] sm:$0x1] }
  0x21   :  { %197 = vmatpush3.bf16.msra.mxu0 %v219_v7 }
  0x22   :  { %198 = vmatprep.subr.bf16.mxu0 %v277_v0 }
  0x25   :  { %199 = vmatpush3.bf16.msra.mxu0 %v220_v8 }
  0x26   :  { %200 = vmatprep.subr.bf16.mxu0 %v277_v0 }
  0x29   :  { %201 = vmatpush3.bf16.msra.mxu0 %v221_v9 }
  0x2a   :  { %202 = vmatprep.subr.bf16.mxu0 %v277_v0 }
  0x2d   :  { %203 = vmatpush3.bf16.msra.mxu0 %v222_v10 }
  0x2e   :  { %204 = vmatprep.subr.bf16.mxu0 %v277_v0 }
  0x31   :  { %205 = vmatpush3.bf16.msra.mxu0 %v223_v11 }
  0x34   :  { %207 = vmatmul.mubr.bf16.vlgmr.msra.gmra.mrb[0].mxu0 %v45_v13 }
 0x107   :  { %v144_v15 = vpop.f32.mrb[0].mxu0 }
 0x108   :  { %v150_v16 = vadd.f32 %v144_v15, %v43_v14  ;;  %v208_v17 = vpop.f32.mrb[1].mxu0 }
 0x109   :  { %v147_v18 = vpop.f32.mrb[2].mxu0 }
 0x10a   :  { %151 = vst [vmem:[#allocation2] sm:$0x1] %v150_v16  ;;  %v209_v19 = vpop.f32.mrb[3].mxu0 }
 0x111   :  { %v155_v20 = vld [vmem:[#allocation2] sm:$0x1] }
 0x112   :  { %224 = vtanh.f32 %v155_v20 }
 0x11c   :  { %v225_v21 = vpop.eup %224 }
 0x11d   :  { %157 = vst [vmem:[#allocation7] sm:$0x1] %v225_v21 }
 0x11e   :  { %259 = shalt.err (!%p256_p12)
}
 0x11f   :  { %s260_s11 = scalar_lea.hbm %s342_s4, 16 }
 0x120   :  { %p261_p13 = scmp.ne.s32.totalorder %s342_s4, %s260_s11  ;;  %p264_p0 = scmp.lt.u32.totalorder %s260_s11, %s342_s4 }
 0x122   :  { %p266_p1 = pnand %p264_p0, %p261_p13 }
 0x124   :  { %269 = shalt.err (!%p266_p1)
}
 0x125   :  { %167 = dma.vmem_to_hbm [thread:$0]  %s165_s7, 16, %s342_s4, [#allocation6]  }
 0x126   :  { %272 = dma.done.wait [#allocation6], 16  }
 0x127   :  { %273 = vsyncadd [#allocation6], 4294967280 }
 0x128   :  { %171 = vsyncpa [#allocation5], 1 }
 0x129   :  { %172 = vsyncpa [#allocation6], 1 }

</bundles_post_ra>
